<compile_context>
chip_gen: v7x
topology: tpu7x:2x2x1
jax: 0.10.0
libtpu: 0.0.40
codegen_flags: <defaults>
</compile_context>

<pallas_src>
import functools

import jax
import jax.numpy as jnp
from jax.experimental import pallas as pl
from jax.experimental.pallas import tpu as pltpu


_LANES = 512          # lane-dense slab width (multiple of 128)
_MAX_TILE_ROWS = 256  # (256, 512) f32 block = 512 KiB per buffer; 5 bufs x2 ~ 5 MiB VMEM


def _complex_dropout_kernel(keep_threshold, scale, bits_ref, real_ref, imag_ref,
                            out_r_ref, out_i_ref):
    """Elementwise dropout on real & imag with two independent masks.

    One 32-bit random draw per element: low 16 bits mask `real`, high 16 bits
    mask `imag`.  keep iff rand16 >= round(p * 2^16), i.e. P(keep) = 1 - p.
    Kept elements are scaled by 1 / (1 - p), matching nn.Dropout (training).
    """
    bits = bits_ref[...]
    thr = jnp.uint32(keep_threshold)
    keep_r = (bits & jnp.uint32(0xFFFF)) >= thr
    keep_i = (bits >> jnp.uint32(16)) >= thr

    r = real_ref[...]
    i = imag_ref[...]
    out_r_ref[...] = jnp.where(keep_r, r * jnp.asarray(scale, r.dtype), jnp.zeros_like(r))
    out_i_ref[...] = jnp.where(keep_i, i * jnp.asarray(scale, i.dtype), jnp.zeros_like(i))


def _pad_to_slab(x, padded_rows):
    """Flatten x, zero-pad to padded_rows*_LANES elements, reshape lane-dense."""
    total = x.size
    flat = x.reshape(-1)
    padded_total = padded_rows * _LANES
    if padded_total != total:
        flat = jnp.pad(flat, (0, padded_total - total))
    return flat.reshape(padded_rows, _LANES)


def complex_dropout(real, imag, p, seed, training=True):
    """Pallas equivalent of ComplexDropout.forward (training mode applies dropout)."""
    if (not training) or p == 0.0:
        return real, imag
    if p >= 1.0:
        return jnp.zeros_like(real), jnp.zeros_like(imag)

    assert real.size == imag.size, "real/imag must have the same number of elements"

    total = real.size
    rows = -(-total // _LANES)  # ceil
    if rows >= _MAX_TILE_ROWS:
        tile_rows = _MAX_TILE_ROWS
    else:
        tile_rows = max(8, ((rows + 7) // 8) * 8)  # keep (8,128) tiling friendly
    padded_rows = -(-rows // tile_rows) * tile_rows

    r2 = _pad_to_slab(real, padded_rows)
    i2 = _pad_to_slab(imag, padded_rows)

    # One 32-bit draw per element; both masks derive from it (16 bits each).
    bits = jax.random.bits(jax.random.PRNGKey(seed), (padded_rows, _LANES),
                           dtype=jnp.uint32)

    keep_threshold = int(round(float(p) * 65536.0))
    scale = 1.0 / (1.0 - float(p))
    kernel = functools.partial(_complex_dropout_kernel, keep_threshold, scale)

    grid = (padded_rows // tile_rows,)
    spec = pl.BlockSpec((tile_rows, _LANES), lambda i: (i, 0))

    out_r2, out_i2 = pl.pallas_call(
        kernel,
        out_shape=(
            jax.ShapeDtypeStruct((padded_rows, _LANES), real.dtype),
            jax.ShapeDtypeStruct((padded_rows, _LANES), imag.dtype),
        ),
        grid=grid,
        in_specs=[spec, spec, spec],
        out_specs=(spec, spec),
        compiler_params=pltpu.CompilerParams(
            dimension_semantics=("parallel",),
        ),
    )(bits, r2, i2)

    out_r = out_r2.reshape(-1)[:total].reshape(real.shape)
    out_i = out_i2.reshape(-1)[:total].reshape(imag.shape)
    return out_r, out_i


if __name__ == "__main__":
    p = 0.3
    key = jax.random.PRNGKey(0)
    k_r, k_i = jax.random.split(key)

    # Small shapes consistent with a complex-valued feature map: (B, C, H, W)
    real = jax.random.normal(k_r, (2, 4, 16, 16), dtype=jnp.float32)
    imag = jax.random.normal(k_i, (2, 4, 16, 16), dtype=jnp.float32)

    out_real, out_imag = complex_dropout(real, imag, p, seed=1234, training=True)
    out_real, out_imag = jax.block_until_ready((out_real, out_imag))

    # sanity checks: shapes preserved; surviving elements are scaled by 1/(1-p)
    assert out_real.shape == real.shape and out_imag.shape == imag.shape
    scale = 1.0 / (1.0 - p)
    kept_r = out_real != 0
    kept_i = out_imag != 0
    assert jnp.allclose(out_real[kept_r], real[kept_r] * scale, rtol=1e-5, atol=1e-5)
    assert jnp.allclose(out_imag[kept_i], imag[kept_i] * scale, rtol=1e-5, atol=1e-5)
    # the two masks should be independent (extremely unlikely to be identical)
    assert not bool(jnp.all(kept_r == kept_i))
    # keep rate roughly 1 - p (loose bounds; 2048 samples)
    frac_r = float(jnp.mean(kept_r.astype(jnp.float32)))
    frac_i = float(jnp.mean(kept_i.astype(jnp.float32)))
    assert 0.6 < frac_r < 0.8 and 0.6 < frac_i < 0.8

    # eval mode / p == 0 is identity
    er, ei = complex_dropout(real, imag, p, seed=1234, training=False)
    assert jnp.array_equal(er, real) and jnp.array_equal(ei, imag)

    print("KERNEL_OK")
</pallas_src>

<mosaic_0001>
module attributes {stable_mosaic.version = 11 : i64} {
  func.func @_complex_dropout_kernel(%arg0: i32, %arg1: memref<8x512xi32, #tpu.memory_space<vmem>>, %arg2: memref<8x512xf32, #tpu.memory_space<vmem>>, %arg3: memref<8x512xf32, #tpu.memory_space<vmem>>, %arg4: memref<8x512xf32, #tpu.memory_space<vmem>>, %arg5: memref<8x512xf32, #tpu.memory_space<vmem>>) attributes {dimension_semantics = [#tpu.dimension_semantics<parallel>], iteration_bounds = array<i64: 1>, scalar_prefetch = 0 : i64, scratch_operands = 0 : i64, tpu.core_type = #tpu.core_type<tc>, window_params = [{transform_indices = @transform_0, window_bounds = array<i64: 8, 512>}, {transform_indices = @transform_1, window_bounds = array<i64: 8, 512>}, {transform_indices = @transform_2, window_bounds = array<i64: 8, 512>}, {transform_indices = @transform_3, window_bounds = array<i64: 8, 512>}, {transform_indices = @transform_4, window_bounds = array<i64: 8, 512>}]} {
    %c0 = arith.constant 0 : index
    %c0_0 = arith.constant 0 : index
    %0 = vector.load %arg1[%c0, %c0_0] : memref<8x512xi32, #tpu.memory_space<vmem>>, vector<8x512xi32>
    %c65535_i32 = arith.constant 65535 : i32
    %1 = vector.broadcast %c65535_i32 : i32 to vector<8x512xi32>
    %2 = arith.andi %0, %1 : vector<8x512xi32>
    %c19661_i32 = arith.constant 19661 : i32
    %3 = vector.broadcast %c19661_i32 : i32 to vector<8x512xi32>
    %4 = arith.cmpi uge, %2, %3 : vector<8x512xi32>
    %c16_i32 = arith.constant 16 : i32
    %5 = vector.broadcast %c16_i32 : i32 to vector<8x512xi32>
    %6 = arith.shrui %0, %5 : vector<8x512xi32>
    %c19661_i32_1 = arith.constant 19661 : i32
    %7 = vector.broadcast %c19661_i32_1 : i32 to vector<8x512xi32>
    %8 = arith.cmpi uge, %6, %7 : vector<8x512xi32>
    %c0_2 = arith.constant 0 : index
    %c0_3 = arith.constant 0 : index
    %9 = vector.load %arg2[%c0_2, %c0_3] : memref<8x512xf32, #tpu.memory_space<vmem>>, vector<8x512xf32>
    %c0_4 = arith.constant 0 : index
    %c0_5 = arith.constant 0 : index
    %10 = vector.load %arg3[%c0_4, %c0_5] : memref<8x512xf32, #tpu.memory_space<vmem>>, vector<8x512xf32>
    %cst = arith.constant 1.42857146 : f32
    %11 = vector.broadcast %cst : f32 to vector<8x512xf32>
    %12 = arith.mulf %9, %11 : vector<8x512xf32>
    %cst_6 = arith.constant 0.000000e+00 : f32
    %13 = vector.broadcast %cst_6 : f32 to vector<8x512xf32>
    %14 = arith.select %4, %12, %13 : vector<8x512xi1>, vector<8x512xf32>
    %c0_7 = arith.constant 0 : index
    %c0_8 = arith.constant 0 : index
    %15 = vector.load %arg4[%c0_7, %c0_8] : memref<8x512xf32, #tpu.memory_space<vmem>>, vector<8x512xf32>
    tpu.vector_store %arg4[%c0_7, %c0_8], %14 {strides = array<i32>} : memref<8x512xf32, #tpu.memory_space<vmem>>, vector<8x512xf32>,
    %cst_9 = arith.constant 1.42857146 : f32
    %16 = vector.broadcast %cst_9 : f32 to vector<8x512xf32>
    %17 = arith.mulf %10, %16 : vector<8x512xf32>
    %cst_10 = arith.constant 0.000000e+00 : f32
    %18 = vector.broadcast %cst_10 : f32 to vector<8x512xf32>
    %19 = arith.select %8, %17, %18 : vector<8x512xi1>, vector<8x512xf32>
    %c0_11 = arith.constant 0 : index
    %c0_12 = arith.constant 0 : index
    %20 = vector.load %arg5[%c0_11, %c0_12] : memref<8x512xf32, #tpu.memory_space<vmem>>, vector<8x512xf32>
    tpu.vector_store %arg5[%c0_11, %c0_12], %19 {strides = array<i32>} : memref<8x512xf32, #tpu.memory_space<vmem>>, vector<8x512xf32>,
    return
  }
  func.func @transform_0(%arg0: i32) -> (i32, i32) {
    %c0_i32 = arith.constant 0 : i32
    %c0_i32_0 = arith.constant 0 : i32
    return %arg0, %c0_i32 : i32, i32
  }
  func.func @transform_1(%arg0: i32) -> (i32, i32) {
    %c0_i32 = arith.constant 0 : i32
    %c0_i32_0 = arith.constant 0 : i32
    return %arg0, %c0_i32 : i32, i32
  }
  func.func @transform_2(%arg0: i32) -> (i32, i32) {
    %c0_i32 = arith.constant 0 : i32
    %c0_i32_0 = arith.constant 0 : i32
    return %arg0, %c0_i32 : i32, i32
  }
  func.func @transform_3(%arg0: i32) -> (i32, i32) {
    %c0_i32 = arith.constant 0 : i32
    %c0_i32_0 = arith.constant 0 : i32
    return %arg0, %c0_i32 : i32, i32
  }
  func.func @transform_4(%arg0: i32) -> (i32, i32) {
    %c0_i32 = arith.constant 0 : i32
    %c0_i32_0 = arith.constant 0 : i32
    return %arg0, %c0_i32 : i32, i32
  }
}

</mosaic_0001>

<bundles_post_ra>
// kernel: tpu_custom_call.1
= control target key start
LH: loop header
LB: loop body
LE: loop exit
PB: predicated region body
PF: predicated region fallthrough
CT: control target
= control target key end

     0   :  { %10 = vsyncpa [#allocation3], 0  ;;  %s369_s0 = inlined_call_operand.hbm [shape: u32[8,512], index: 0, kind: input, shape index: {}]   ;;  %s370_s1 = inlined_call_operand.hbm [shape: f32[8,512], index: 1, kind: input, shape index: {}]   ;;  %s371_s2 = inlined_call_operand.hbm [shape: f32[8,512], index: 2, kind: input, shape index: {}]   ;;  %s372_s3 = inlined_call_operand.hbm [shape: f32[8,512], index: 3, kind: output, shape index: {0}]   ;;  %s373_s4 = inlined_call_operand.hbm [shape: f32[8,512], index: 4, kind: output, shape index: {1}]  }
   0x1   :  { %11 = vsyncpa [#allocation6], 0 }
   0x2   :  { %12 = vsyncpa [#allocation4], 0 }
   0x3   :  { %13 = vsyncpa [#allocation10], 0  ;;  %s258_s15 = smov [#allocation5]   ;;  %s259_s17 = smov [#allocation2]  }
   0x4   :  { %s30_s16 = sshll.u32 %s258_s15, 4  ;;  %s20_s18 = sshll.u32 %s259_s17, 4  ;;  %s31_s16 = int_to_ptr.vmem [resolvable:$true] %s30_s16  ;;  %s21_s18 = int_to_ptr.vmem [resolvable:$true] %s20_s18 }
   0x5   :  { %s140_s21 = scalar_lea.hbm %s370_s1, 512 }
   0x6   :  { %p141_p0 = scmp.ne.s32.totalorder %s370_s1, %s140_s21  ;;  %p144_p1 = scmp.lt.u32.totalorder %s140_s21, %s370_s1 }
   0x8   :  { %p146_p2 = pnand %p144_p1, %p141_p0 }
   0xa   :  { %149 = shalt.err (!%p146_p2)
}
   0xb   :  { %s150_s26 = scalar_lea.vmem %s31_s16, 512  ;;  %p155_p4 = scmp.lt.s32.totalorder %s31_s16, %s31_s16 }
   0xc   :  { %p151_p3 = scmp.ne.s32.totalorder %s31_s16, %s150_s26  ;;  %p156_p5 = scmp.lt.s32.totalorder %s150_s26, %s150_s26 }
   0xe   :  { %p157_p6 = por %p156_p5, %p155_p4 }
  0x10   :  { %p158_p7 = pnand %p157_p6, %p151_p3 }
  0x12   :  { %161 = shalt.err (!%p158_p7)
}
  0x13   :  { %33 = dma.hbm_to_vmem [thread:$0]  %s370_s1, 512, %s31_s16, [#allocation6]  }
  0x14   :  { %s162_s5 = scalar_lea.hbm %s369_s0, 512 }
  0x15   :  { %p163_p8 = scmp.ne.s32.totalorder %s369_s0, %s162_s5  ;;  %p166_p9 = scmp.lt.u32.totalorder %s162_s5, %s369_s0 }
  0x17   :  { %p168_p10 = pnand %p166_p9, %p163_p8 }
  0x19   :  { %171 = shalt.err (!%p168_p10)
}
  0x1a   :  { %s172_s10 = scalar_lea.vmem %s21_s18, 512  ;;  %p177_p12 = scmp.lt.s32.totalorder %s21_s18, %s21_s18 }
  0x1b   :  { %p173_p11 = scmp.ne.s32.totalorder %s21_s18, %s172_s10  ;;  %p178_p13 = scmp.lt.s32.totalorder %s172_s10, %s172_s10 }
  0x1d   :  { %p179_p0 = por %p178_p13, %p177_p12 }
  0x1f   :  { %p180_p1 = pnand %p179_p0, %p173_p11 }
  0x21   :  { %183 = shalt.err (!%p180_p1)
}
  0x22   :  { %23 = dma.hbm_to_vmem [thread:$0]  %s369_s0, 512, %s21_s18, [#allocation3]  }
  0x23   :  { %s260_s12 = smov [#allocation7]   ;;  %s184_s16 = scalar_lea.hbm %s371_s2, 512 }
  0x24   :  { %s40_s13 = sshll.u32 %s260_s12, 4  ;;  %p185_p2 = scmp.ne.s32.totalorder %s371_s2, %s184_s16  ;;  %s41_s13 = int_to_ptr.vmem [resolvable:$true] %s40_s13 }
  0x25   :  { %p188_p3 = scmp.lt.u32.totalorder %s184_s16, %s371_s2 }
  0x27   :  { %p190_p4 = pnand %p188_p3, %p185_p2 }
  0x29   :  { %193 = shalt.err (!%p190_p4)
}
  0x2a   :  { %s194_s22 = scalar_lea.vmem %s41_s13, 512  ;;  %p199_p6 = scmp.lt.s32.totalorder %s41_s13, %s41_s13 }
  0x2b   :  { %p195_p5 = scmp.ne.s32.totalorder %s41_s13, %s194_s22  ;;  %p200_p7 = scmp.lt.s32.totalorder %s194_s22, %s194_s22 }
  0x2d   :  { %p201_p8 = por %p200_p7, %p199_p6 }
  0x2f   :  { %p202_p9 = pnand %p201_p8, %p195_p5 }
  0x31   :  { %205 = shalt.err (!%p202_p9)
}
  0x32   :  { %43 = dma.hbm_to_vmem [thread:$0]  %s371_s2, 512, %s41_s13, [#allocation6]  }
  0x33   :  { %250 = dma.done.wait [#allocation3], 512  }
  0x34   :  { %251 = vsyncadd [#allocation3], 4294966784 }
  0x35   :  { %252 = dma.done.wait [#allocation6], 1024  }
  0x36   :  { %253 = vsyncadd [#allocation6], 4294966272  ;;  %v53_v0 = vld [vmem:[#allocation2] sm:$0xff]  ;;  %v54_v2 = vld [vmem:[#allocation2 + $0x8] sm:$0xff]  ;;  %s261_s23 = smov [#allocation8]   ;;  %s262_s25 = smov [#allocation9]  }
  0x37   :  { %v73_v1 = vld [vmem:[#allocation5] sm:$0xff]  ;;  %s111_s24 = sshll.u32 %s261_s23, 4  ;;  %s324_s26 = sshll.u32 %s262_s25, 4  ;;  %v57_v3 = vand.u32 65535, %v53_v0  ;;  %v58_v5 = vand.u32 65535, %v54_v2  ;;  %v74_v6 = vld [vmem:[#allocation5 + $0x8] sm:$0xff]  ;;  %s112_s24 = int_to_ptr.vmem [resolvable:$true] %s111_s24  ;;  %s122_s26 = int_to_ptr.vmem [resolvable:$true] %s324_s26 }
  0x38   :  { %v81_v4 = vmul.f32 1.4285715, %v73_v1  ;;  %v55_v7 = vld [vmem:[#allocation2 + $0x10] sm:$0xff]  ;;  %v82_v8 = vmul.f32 1.4285715, %v74_v6  ;;  %v56_v11 = vld [vmem:[#allocation2 + $0x18] sm:$0xff]  ;;  %p211_p11 = scmp.lt.s32.totalorder %s112_s24, %s112_s24 }
  0x39   :  { %v59_v9 = vand.u32 65535, %v55_v7  ;;  %v75_v10 = vld [vmem:[#allocation5 + $0x10] sm:$0xff]  ;;  %v76_v12 = vld [vmem:[#allocation5 + $0x18] sm:$0xff]  ;;  %vm61_vm0 = vcmp.ge.u32.totalorder %v57_v3, 19661  ;;  %vm62_vm1 = vcmp.ge.u32.totalorder %v58_v5, 19661  ;;  %v60_v14 = vand.u32 65535, %v56_v11 }
  0x3a   :  { %v83_v13 = vmul.f32 1.4285715, %v75_v10  ;;  %v77_v15 = vld [vmem:[#allocation7] sm:$0xff]  ;;  %v85_v16 = vsel %vm61_vm0, %v81_v4, 0.0  ;;  %v86_v17 = vsel %vm62_vm1, %v82_v8, 0.0  ;;  %v78_v19 = vld [vmem:[#allocation7 + $0x8] sm:$0xff] }
  0x3b   :  { %vm63_vm2 = vcmp.ge.u32.totalorder %v59_v9, 19661  ;;  %v84_v18 = vmul.f32 1.4285715, %v76_v12  ;;  %89 = vst [vmem:[#allocation8] sm:$0xff] %v85_v16  ;;  %90 = vst [vmem:[#allocation8 + $0x8] sm:$0xff] %v86_v17  ;;  %vm64_vm3 = vcmp.ge.u32.totalorder %v60_v14, 19661 }
  0x3c   :  { %v87_v20 = vsel %vm63_vm2, %v83_v13, 0.0  ;;  %v65_v21 = vshrl.u32 %v53_v0, 16  ;;  %v93_v22 = vmul.f32 1.4285715, %v77_v15  ;;  %v79_v23 = vld [vmem:[#allocation7 + $0x10] sm:$0xff]  ;;  %v66_v25 = vshrl.u32 %v54_v2, 16 }
  0x3d   :  { %91 = vst [vmem:[#allocation8 + $0x10] sm:$0xff] %v87_v20  ;;  %v88_v24 = vsel %vm64_vm3, %v84_v18, 0.0  ;;  %v94_v26 = vmul.f32 1.4285715, %v78_v19  ;;  %v67_v27 = vshrl.u32 %v55_v7, 16  ;;  %v80_v28 = vld [vmem:[#allocation7 + $0x18] sm:$0xff] }
  0x3e   :  { %92 = vst [vmem:[#allocation8 + $0x18] sm:$0xff] %v88_v24  ;;  %vm326_vm4 = vcmp.ge.u32.totalorder %v65_v21, 19661  ;;  %v95_v30 = vmul.f32 1.4285715, %v79_v23  ;;  %v68_v31 = vshrl.u32 %v56_v11, 16  ;;  %vm332_vm5 = vcmp.ge.u32.totalorder %v66_v25, 19661 }
  0x3f   :  { %v96_v32 = vmul.f32 1.4285715, %v80_v28  ;;  %v97_v33 = vsel %vm326_vm4, %v93_v22, 0.0  ;;  %vm336_vm6 = vcmp.ge.u32.totalorder %v67_v27, 19661  ;;  %s206_s2 = scalar_lea.vmem %s112_s24, 512 }
  0x40   :  { %p207_p10 = scmp.ne.s32.totalorder %s112_s24, %s206_s2  ;;  %p212_p12 = scmp.lt.s32.totalorder %s206_s2, %s206_s2 }
  0x42   :  { %p213_p13 = por %p212_p12, %p211_p11 }
  0x44   :  { %p214_p0 = pnand %p213_p13, %p207_p10 }
  0x46   :  { %217 = shalt.err (!%p214_p0)
}
  0x47   :  { %s218_s29 = scalar_lea.hbm %s372_s3, 512 }
  0x48   :  { %p219_p1 = scmp.ne.s32.totalorder %s372_s3, %s218_s29  ;;  %p222_p2 = scmp.lt.u32.totalorder %s218_s29, %s372_s3 }
  0x4a   :  { %p224_p3 = pnand %p222_p2, %p219_p1 }
  0x4c   :  { %227 = shalt.err (!%p224_p3)
}
  0x4d   :  { %114 = dma.vmem_to_hbm [thread:$0]  %s112_s24, 512, %s372_s3, [#allocation4]   ;;  %101 = vst [vmem:[#allocation9] sm:$0xff] %v97_v33  ;;  %v98_v36 = vsel %vm332_vm5, %v94_v26, 0.0  ;;  %v99_v37 = vsel %vm336_vm6, %v95_v30, 0.0  ;;  %vm72_vm7 = vcmp.ge.u32.totalorder %v68_v31, 19661 }
  0x4e   :  { %102 = vst [vmem:[#allocation9 + $0x8] sm:$0xff] %v98_v36  ;;  %103 = vst [vmem:[#allocation9 + $0x10] sm:$0xff] %v99_v37  ;;  %v100_v38 = vsel %vm72_vm7, %v96_v32, 0.0  ;;  %s228_s10 = scalar_lea.vmem %s122_s26, 512  ;;  %p233_p5 = scmp.lt.s32.totalorder %s122_s26, %s122_s26 }
  0x4f   :  { %104 = vst [vmem:[#allocation9 + $0x18] sm:$0xff] %v100_v38  ;;  %p229_p4 = scmp.ne.s32.totalorder %s122_s26, %s228_s10  ;;  %p234_p6 = scmp.lt.s32.totalorder %s228_s10, %s228_s10 }
  0x51   :  { %p235_p7 = por %p234_p6, %p233_p5 }
  0x53   :  { %p236_p8 = pnand %p235_p7, %p229_p4 }
  0x55   :  { %239 = shalt.err (!%p236_p8)
}
  0x56   :  { %s240_s11 = scalar_lea.hbm %s373_s4, 512 }
  0x57   :  { %p241_p9 = scmp.ne.s32.totalorder %s373_s4, %s240_s11  ;;  %p244_p10 = scmp.lt.u32.totalorder %s240_s11, %s373_s4 }
  0x59   :  { %p246_p11 = pnand %p244_p10, %p241_p9 }
  0x5b   :  { %249 = shalt.err (!%p246_p11)
}
  0x5c   :  { %124 = dma.vmem_to_hbm [thread:$0]  %s122_s26, 512, %s373_s4, [#allocation10]  }
  0x5d   :  { %254 = dma.done.wait [#allocation4], 512  }
  0x5e   :  { %255 = vsyncadd [#allocation4], 4294966784 }
  0x5f   :  { %256 = dma.done.wait [#allocation10], 512  }
  0x60   :  { %257 = vsyncadd [#allocation10], 4294966784 }
  0x61   :  { %131 = vsyncpa [#allocation3], 1 }
  0x62   :  { %132 = vsyncpa [#allocation6], 1 }
  0x63   :  { %133 = vsyncpa [#allocation4], 1 }
  0x64   :  { %134 = vsyncpa [#allocation10], 1 }

</bundles_post_ra>
